<compile_context>
chip_gen: v6e
topology: v6e:2x2x1
jax: 0.10.0
libtpu: 0.0.40
codegen_flags: <defaults>
</compile_context>

<pallas_src>
import functools
import math

import jax
import jax.numpy as jnp
from jax.experimental import pallas as pl
from jax.experimental.pallas import tpu as pltpu


def _round_up(x, m):
    return ((x + m - 1) // m) * m


def actor_forward_kernel(state_ref, w1_ref, b1_ref, w2_ref, b2_ref,
                         wh_ref, bh_ref, mean_ref, logstd_ref, *, action_dim):
    """Fused Linear->ReLU->Linear->ReLU->merged (mean | log_std) head."""
    # Compute (MXU input) dtype follows the packed weights: bf16 by default
    # (native systolic path, f32 accumulation), f32 for the exact path.
    cdt = w1_ref.dtype

    x = state_ref[...].astype(cdt)                                       # (TB, S)

    # encoder layer 1 (lane dim padded to 128)
    h1 = jnp.dot(x, w1_ref[...], preferred_element_type=jnp.float32) + b1_ref[...]
    h1 = jnp.maximum(h1, 0.0)

    # encoder layer 2
    h2 = jnp.dot(h1.astype(cdt), w2_ref[...],
                 preferred_element_type=jnp.float32) + b2_ref[...]
    h2 = jnp.maximum(h2, 0.0)

    # merged head: lanes [0, A) = mean, lanes [A, 2A) = log_std, rest = 0
    head = jnp.dot(h2.astype(cdt), wh_ref[...],
                   preferred_element_type=jnp.float32) + bh_ref[...]

    mean_ref[...] = head[:, :action_dim].astype(mean_ref.dtype)
    logstd_ref[...] = jnp.clip(head[:, action_dim:2 * action_dim],
                               -20.0, 2.0).astype(logstd_ref.dtype)


def actor_forward(state, packed, *, action_dim, batch_tile=1024):
    """Run the fused actor forward.

    state:  (B, state_dim) f32
    packed: dict from pack_params (lane-padded, heads merged)
    returns (mean, log_std), each (B, action_dim) f32.
    """
    B, S = state.shape
    H_PAD = packed["w1"].shape[1]
    HEAD_PAD = packed["w_head"].shape[1]

    # Batch tile: at least 2 grid steps when B > 8 (v7x dual-TensorCore
    # occupancy), capped at batch_tile to amortize per-step overhead on large
    # batches.  Multiple of 8 keeps the (8,128) sublane rule satisfied; tail
    # blocks (B % TB != 0) are handled by Pallas padding.
    if B <= 8:
        TB = B
    else:
        TB = min(batch_tile, max(8, _round_up(pl.cdiv(B, 2), 8)))
    grid = (pl.cdiv(B, TB),)

    kernel = functools.partial(actor_forward_kernel, action_dim=action_dim)

    flops = 2 * B * (S * H_PAD + H_PAD * H_PAD + H_PAD * HEAD_PAD)
    param_bytes = sum(int(v.size) * jnp.dtype(v.dtype).itemsize
                      for v in packed.values())
    bytes_accessed = (4 * B * S                 # state in (f32)
                      + param_bytes             # weights (bf16) + biases (f32)
                      + 2 * 4 * B * action_dim)  # mean + log_std out (f32)

    # Weights/biases use constant index maps -> single-buffered (never re-DMA).
    resident = pl.Buffered(1)

    mean, log_std = pl.pallas_call(
        kernel,
        out_shape=(jax.ShapeDtypeStruct((B, action_dim), jnp.float32),
                   jax.ShapeDtypeStruct((B, action_dim), jnp.float32)),
        grid_spec=pltpu.PrefetchScalarGridSpec(
            num_scalar_prefetch=0,
            grid=grid,
            in_specs=[
                pl.BlockSpec((TB, S), lambda i: (i, 0)),              # state tile
                pl.BlockSpec((S, H_PAD), lambda i: (0, 0),
                             pipeline_mode=resident),                 # w1
                pl.BlockSpec((1, H_PAD), lambda i: (0, 0),
                             pipeline_mode=resident),                 # b1
                pl.BlockSpec((H_PAD, H_PAD), lambda i: (0, 0),
                             pipeline_mode=resident),                 # w2
                pl.BlockSpec((1, H_PAD), lambda i: (0, 0),
                             pipeline_mode=resident),                 # b2
                pl.BlockSpec((H_PAD, HEAD_PAD), lambda i: (0, 0),
                             pipeline_mode=resident),                 # merged head w
                pl.BlockSpec((1, HEAD_PAD), lambda i: (0, 0),
                             pipeline_mode=resident),                 # merged head b
            ],
            out_specs=[
                pl.BlockSpec((TB, action_dim), lambda i: (i, 0)),     # mean
                pl.BlockSpec((TB, action_dim), lambda i: (i, 0)),     # log_std
            ],
        ),
        # Working set (weights ~70KB bf16 + a few TB-row tiles) is far below
        # every generation's scoped-VMEM default, so no vmem_limit_bytes
        # override is needed even at batch_tile=2048.
        compiler_params=pltpu.CompilerParams(
            dimension_semantics=("parallel",)),
        cost_estimate=pl.CostEstimate(
            flops=flops, transcendentals=0, bytes_accessed=bytes_accessed),
    )(state, packed["w1"], packed["b1"], packed["w2"], packed["b2"],
      packed["w_head"], packed["b_head"])

    return mean, log_std


def init_params(key, state_dim, hidden_dim, action_dim):
    """Deterministic synthetic init matching the PyTorch module's shapes.

    Encoder layers: PyTorch default Linear init U(-1/sqrt(fan_in), 1/sqrt(fan_in)).
    Heads: U(-0.003, 0.003) as in the module's __init__.
    Weights stored as (in, out) = transpose of torch's (out, in).
    """
    ks = jax.random.split(key, 8)

    def u(k, shape, bound):
        return jax.random.uniform(k, shape, jnp.float32, -bound, bound)

    b_enc1 = 1.0 / math.sqrt(state_dim)
    b_enc2 = 1.0 / math.sqrt(hidden_dim)
    return {
        "w1": u(ks[0], (state_dim, hidden_dim), b_enc1),
        "b1": u(ks[1], (1, hidden_dim), b_enc1),
        "w2": u(ks[2], (hidden_dim, hidden_dim), b_enc2),
        "b2": u(ks[3], (1, hidden_dim), b_enc2),
        "wm": u(ks[4], (hidden_dim, action_dim), 0.003),
        "bm": u(ks[5], (1, action_dim), 0.003),
        "ws": u(ks[6], (hidden_dim, action_dim), 0.003),
        "bs": u(ks[7], (1, action_dim), 0.003),
    }


def pack_params(p, dtype=jnp.bfloat16):
    """Zero-pad lane dims to 128 and merge the two heads into one weight.

    Weights are cast to `dtype` (default bf16 -> native MXU path, half the
    weight DMA); biases stay f32 (they feed the f32 VPU epilogue).  The mean
    head occupies output lanes [0, A), log_std head lanes [A, 2A).  Pass
    dtype=jnp.float32 for an exact-f32 kernel path.
    """
    S, H = p["w1"].shape
    A = p["wm"].shape[1]
    H_PAD = _round_up(H, 128)
    HEAD_PAD = _round_up(2 * A, 128)

    w1 = jnp.zeros((S, H_PAD), dtype).at[:, :H].set(p["w1"].astype(dtype))
    b1 = jnp.zeros((1, H_PAD), jnp.float32).at[:, :H].set(p["b1"])
    w2 = jnp.zeros((H_PAD, H_PAD), dtype).at[:H, :H].set(p["w2"].astype(dtype))
    b2 = jnp.zeros((1, H_PAD), jnp.float32).at[:, :H].set(p["b2"])
    w_head = (jnp.zeros((H_PAD, HEAD_PAD), dtype)
              .at[:H, :A].set(p["wm"].astype(dtype))
              .at[:H, A:2 * A].set(p["ws"].astype(dtype)))
    b_head = (jnp.zeros((1, HEAD_PAD), jnp.float32)
              .at[:, :A].set(p["bm"])
              .at[:, A:2 * A].set(p["bs"]))
    return {"w1": w1, "b1": b1, "w2": w2, "b2": b2,
            "w_head": w_head, "b_head": b_head}


def reference_forward(state, p):
    """Plain-JAX f32 reference for correctness check (unpadded params)."""
    h1 = jnp.maximum(state @ p["w1"] + p["b1"], 0.0)
    h2 = jnp.maximum(h1 @ p["w2"] + p["b2"], 0.0)
    mean = h2 @ p["wm"] + p["bm"]
    log_std = jnp.clip(h2 @ p["ws"] + p["bs"], -20.0, 2.0)
    return mean, log_std


if __name__ == "__main__":
    # Small shapes consistent with the module: batch=8, state_dim=16,
    # hidden_dim=32, action_dim=8.
    batch, state_dim, hidden_dim, action_dim = 8, 16, 32, 8

    key = jax.random.PRNGKey(0)
    k_state, k_params = jax.random.split(key)

    state = jax.random.normal(k_state, (batch, state_dim), jnp.float32)
    params = init_params(k_params, state_dim, hidden_dim, action_dim)
    ref_mean, ref_log_std = reference_forward(state, params)

    # 1) Exact f32 path (f32 packed weights -> f32 activations in-kernel):
    #    validates the kernel math tightly against the PyTorch-equivalent ref.
    packed_f32 = pack_params(params, dtype=jnp.float32)
    mean, log_std = actor_forward(state, packed_f32, action_dim=action_dim)
    jax.block_until_ready((mean, log_std))
    assert mean.shape == (batch, action_dim) and log_std.shape == (batch, action_dim)
    assert jnp.allclose(mean, ref_mean, atol=1e-5, rtol=1e-5)
    assert jnp.allclose(log_std, ref_log_std, atol=1e-5, rtol=1e-5)

    # 2) Performance default: bf16 MXU inputs with f32 accumulation.
    #    Looser tolerance (bf16 rounding of matmul inputs only).
    packed_bf16 = pack_params(params)
    mean_b, log_std_b = actor_forward(state, packed_bf16, action_dim=action_dim)
    jax.block_until_ready((mean_b, log_std_b))
    assert jnp.allclose(mean_b, ref_mean, atol=2e-3, rtol=2e-2)
    assert jnp.allclose(log_std_b, ref_log_std, atol=2e-3, rtol=2e-2)
    assert float(log_std_b.max()) <= 2.0 and float(log_std_b.min()) >= -20.0

    # 3) Multi-step grid path (>= 2 tiles + a partial tail block), the shape
    #    regime where v7x shards the batch axis across both TensorCores.
    state_big = jax.random.normal(jax.random.PRNGKey(1), (24, state_dim),
                                  jnp.float32)
    ref_mean2, ref_log_std2 = reference_forward(state_big, params)
    mean2, log_std2 = actor_forward(state_big, packed_bf16, action_dim=action_dim)
    jax.block_until_ready((mean2, log_std2))
    assert mean2.shape == (24, action_dim) and log_std2.shape == (24, action_dim)
    assert jnp.allclose(mean2, ref_mean2, atol=2e-3, rtol=2e-2)
    assert jnp.allclose(log_std2, ref_log_std2, atol=2e-3, rtol=2e-2)

    # TODO(synk): `sample()` uses torch.distributions.Normal.rsample (host-side
    # RNG reparameterization + tanh squash + log-prob); it is a thin wrapper
    # around forward() and not part of the kernel hot path, so it is left out.

    print("KERNEL_OK")
</pallas_src>

<mosaic_0001>
module attributes {stable_mosaic.version = 11 : i64} {
  func.func @actor_forward_kernel(%arg0: i32, %arg1: memref<8x16xf32, #tpu.memory_space<vmem>>, %arg2: memref<16x128xf32, #tpu.memory_space<vmem>>, %arg3: memref<1x128xf32, #tpu.memory_space<vmem>>, %arg4: memref<128x128xf32, #tpu.memory_space<vmem>>, %arg5: memref<1x128xf32, #tpu.memory_space<vmem>>, %arg6: memref<128x128xf32, #tpu.memory_space<vmem>>, %arg7: memref<1x128xf32, #tpu.memory_space<vmem>>, %arg8: memref<8x8xf32, #tpu.memory_space<vmem>>, %arg9: memref<8x8xf32, #tpu.memory_space<vmem>>) attributes {dimension_semantics = [#tpu.dimension_semantics<parallel>], iteration_bounds = array<i64: 1>, scalar_prefetch = 0 : i64, scratch_operands = 0 : i64, tpu.core_type = #tpu.core_type<tc>, window_params = [{transform_indices = @transform_0, window_bounds = array<i64: 8, 16>}, {pipeline_mode = #tpu.pipeline_mode<synchronous>, transform_indices = @transform_1, window_bounds = array<i64: 16, 128>}, {pipeline_mode = #tpu.pipeline_mode<synchronous>, transform_indices = @transform_2, window_bounds = array<i64: 1, 128>}, {pipeline_mode = #tpu.pipeline_mode<synchronous>, transform_indices = @transform_3, window_bounds = array<i64: 128, 128>}, {pipeline_mode = #tpu.pipeline_mode<synchronous>, transform_indices = @transform_4, window_bounds = array<i64: 1, 128>}, {pipeline_mode = #tpu.pipeline_mode<synchronous>, transform_indices = @transform_5, window_bounds = array<i64: 128, 128>}, {pipeline_mode = #tpu.pipeline_mode<synchronous>, transform_indices = @transform_6, window_bounds = array<i64: 1, 128>}, {transform_indices = @transform_7, window_bounds = array<i64: 8, 8>}, {transform_indices = @transform_8, window_bounds = array<i64: 8, 8>}]} {
    %c0 = arith.constant 0 : index
    %c0_0 = arith.constant 0 : index
    %0 = vector.load %arg1[%c0, %c0_0] : memref<8x16xf32, #tpu.memory_space<vmem>>, vector<8x16xf32>
    %c0_1 = arith.constant 0 : index
    %c0_2 = arith.constant 0 : index
    %1 = vector.load %arg2[%c0_1, %c0_2] : memref<16x128xf32, #tpu.memory_space<vmem>>, vector<16x128xf32>
    %cst = arith.constant dense<0.000000e+00> : vector<8x128xf32>
    %2 = tpu.matmul %0, %1, %cst {dimension_numbers = #tpu.dot_dimension_numbers<[1], [0], [0], [1], [0, 0, 1, 1], [], []>} : vector<8x16xf32>, vector<16x128xf32>, vector<8x128xf32> -> vector<8x128xf32>
    %c0_3 = arith.constant 0 : index
    %c0_4 = arith.constant 0 : index
    %3 = vector.load %arg3[%c0_3, %c0_4] : memref<1x128xf32, #tpu.memory_space<vmem>>, vector<1x128xf32>
    %4 = vector.broadcast %3 : vector<1x128xf32> to vector<8x128xf32>
    %5 = arith.addf %2, %4 : vector<8x128xf32>
    %cst_5 = arith.constant 0.000000e+00 : f32
    %6 = vector.broadcast %cst_5 : f32 to vector<8x128xf32>
    %7 = arith.maximumf %5, %6 : vector<8x128xf32>
    %c0_6 = arith.constant 0 : index
    %c0_7 = arith.constant 0 : index
    %8 = vector.load %arg4[%c0_6, %c0_7] : memref<128x128xf32, #tpu.memory_space<vmem>>, vector<128x128xf32>
    %cst_8 = arith.constant dense<0.000000e+00> : vector<8x128xf32>
    %9 = tpu.matmul %7, %8, %cst_8 {dimension_numbers = #tpu.dot_dimension_numbers<[1], [0], [0], [1], [0, 0, 1, 1], [], []>} : vector<8x128xf32>, vector<128x128xf32>, vector<8x128xf32> -> vector<8x128xf32>
    %c0_9 = arith.constant 0 : index
    %c0_10 = arith.constant 0 : index
    %10 = vector.load %arg5[%c0_9, %c0_10] : memref<1x128xf32, #tpu.memory_space<vmem>>, vector<1x128xf32>
    %11 = vector.broadcast %10 : vector<1x128xf32> to vector<8x128xf32>
    %12 = arith.addf %9, %11 : vector<8x128xf32>
    %cst_11 = arith.constant 0.000000e+00 : f32
    %13 = vector.broadcast %cst_11 : f32 to vector<8x128xf32>
    %14 = arith.maximumf %12, %13 : vector<8x128xf32>
    %c0_12 = arith.constant 0 : index
    %c0_13 = arith.constant 0 : index
    %15 = vector.load %arg6[%c0_12, %c0_13] : memref<128x128xf32, #tpu.memory_space<vmem>>, vector<128x128xf32>
    %cst_14 = arith.constant dense<0.000000e+00> : vector<8x128xf32>
    %16 = tpu.matmul %14, %15, %cst_14 {dimension_numbers = #tpu.dot_dimension_numbers<[1], [0], [0], [1], [0, 0, 1, 1], [], []>} : vector<8x128xf32>, vector<128x128xf32>, vector<8x128xf32> -> vector<8x128xf32>
    %c0_15 = arith.constant 0 : index
    %c0_16 = arith.constant 0 : index
    %17 = vector.load %arg7[%c0_15, %c0_16] : memref<1x128xf32, #tpu.memory_space<vmem>>, vector<1x128xf32>
    %18 = vector.broadcast %17 : vector<1x128xf32> to vector<8x128xf32>
    %19 = arith.addf %16, %18 : vector<8x128xf32>
    %20 = vector.extract_strided_slice %19 {offsets = [0, 0], sizes = [8, 8], strides = [1, 1]} : vector<8x128xf32> to vector<8x8xf32>
    %c0_17 = arith.constant 0 : index
    %c0_18 = arith.constant 0 : index
    %21 = vector.load %arg8[%c0_17, %c0_18] : memref<8x8xf32, #tpu.memory_space<vmem>>, vector<8x8xf32>
    tpu.vector_store %arg8[%c0_17, %c0_18], %20 {strides = array<i32>} : memref<8x8xf32, #tpu.memory_space<vmem>>, vector<8x8xf32>,
    %22 = vector.extract_strided_slice %19 {offsets = [0, 8], sizes = [8, 8], strides = [1, 1]} : vector<8x128xf32> to vector<8x8xf32>
    %cst_19 = arith.constant -2.000000e+01 : f32
    %cst_20 = arith.constant 2.000000e+00 : f32
    %23 = vector.broadcast %cst_19 : f32 to vector<8x8xf32>
    %24 = arith.maximumf %23, %22 : vector<8x8xf32>
    %25 = vector.broadcast %cst_20 : f32 to vector<8x8xf32>
    %26 = arith.minimumf %25, %24 : vector<8x8xf32>
    %c0_21 = arith.constant 0 : index
    %c0_22 = arith.constant 0 : index
    %27 = vector.load %arg9[%c0_21, %c0_22] : memref<8x8xf32, #tpu.memory_space<vmem>>, vector<8x8xf32>
    tpu.vector_store %arg9[%c0_21, %c0_22], %26 {strides = array<i32>} : memref<8x8xf32, #tpu.memory_space<vmem>>, vector<8x8xf32>,
    return
  }
  func.func @transform_0(%arg0: i32) -> (i32, i32) {
    %c0_i32 = arith.constant 0 : i32
    %c0_i32_0 = arith.constant 0 : i32
    return %arg0, %c0_i32 : i32, i32
  }
  func.func @transform_1(%arg0: i32) -> (i32, i32) {
    %c0_i32 = arith.constant 0 : i32
    %c0_i32_0 = arith.constant 0 : i32
    %c0_i32_1 = arith.constant 0 : i32
    return %c0_i32, %c0_i32_0 : i32, i32
  }
  func.func @transform_2(%arg0: i32) -> (i32, i32) {
    %c0_i32 = arith.constant 0 : i32
    %c0_i32_0 = arith.constant 0 : i32
    %c0_i32_1 = arith.constant 0 : i32
    return %c0_i32, %c0_i32_0 : i32, i32
  }
  func.func @transform_3(%arg0: i32) -> (i32, i32) {
    %c0_i32 = arith.constant 0 : i32
    %c0_i32_0 = arith.constant 0 : i32
    %c0_i32_1 = arith.constant 0 : i32
    return %c0_i32, %c0_i32_0 : i32, i32
  }
  func.func @transform_4(%arg0: i32) -> (i32, i32) {
    %c0_i32 = arith.constant 0 : i32
    %c0_i32_0 = arith.constant 0 : i32
    %c0_i32_1 = arith.constant 0 : i32
    return %c0_i32, %c0_i32_0 : i32, i32
  }
  func.func @transform_5(%arg0: i32) -> (i32, i32) {
    %c0_i32 = arith.constant 0 : i32
    %c0_i32_0 = arith.constant 0 : i32
    %c0_i32_1 = arith.constant 0 : i32
    return %c0_i32, %c0_i32_0 : i32, i32
  }
  func.func @transform_6(%arg0: i32) -> (i32, i32) {
    %c0_i32 = arith.constant 0 : i32
    %c0_i32_0 = arith.constant 0 : i32
    %c0_i32_1 = arith.constant 0 : i32
    return %c0_i32, %c0_i32_0 : i32, i32
  }
  func.func @transform_7(%arg0: i32) -> (i32, i32) {
    %c0_i32 = arith.constant 0 : i32
    %c0_i32_0 = arith.constant 0 : i32
    return %arg0, %c0_i32 : i32, i32
  }
  func.func @transform_8(%arg0: i32) -> (i32, i32) {
    %c0_i32 = arith.constant 0 : i32
    %c0_i32_0 = arith.constant 0 : i32
    return %arg0, %c0_i32 : i32, i32
  }
}

</mosaic_0001>

<bundles_post_ra>
// kernel: tpu_custom_call.1
= control target key start
LH: loop header
LB: loop body
LE: loop exit
PB: predicated region body
PF: predicated region fallthrough
CT: control target
= control target key end

     0   :  { %14 = vsyncpa [#allocation3], 0  ;;  %s788_s0 = inlined_call_operand.hbm [shape: f32[8,16], index: 0, kind: input, shape index: {}]   ;;  %s789_s1 = inlined_call_operand.hbm [shape: f32[16,128], index: 1, kind: input, shape index: {}]   ;;  %s790_s2 = inlined_call_operand.vmem [shape: f32[1,128], index: 2, kind: input, shape index: {}]   ;;  %s791_s3 = inlined_call_operand.hbm [shape: f32[128,128], index: 3, kind: input, shape index: {}]   ;;  %s792_s4 = inlined_call_operand.vmem [shape: f32[1,128], index: 4, kind: input, shape index: {}]   ;;  %s793_s5 = inlined_call_operand.hbm [shape: f32[128,128], index: 5, kind: input, shape index: {}]   ;;  %s794_s6 = inlined_call_operand.vmem [shape: f32[1,128], index: 6, kind: input, shape index: {}]   ;;  %s795_s7 = inlined_call_operand.hbm [shape: f32[8,8], index: 7, kind: output, shape index: {0}]   ;;  %s796_s8 = inlined_call_operand.hbm [shape: f32[8,8], index: 8, kind: output, shape index: {1}]  }
   0x1   :  { %15 = vsyncpa [#allocation6], 0 }
   0x2   :  { %16 = vsyncpa [#allocation9], 0 }
   0x3   :  { %17 = vsyncpa [#allocation4], 0 }
   0x4   :  { %18 = vsyncpa [#allocation12], 0  ;;  %s654_s27 = smov [#allocation5]  }
   0x5   :  { %s34_s28 = sshll.u32 %s654_s27, 4  ;;  %s35_s28 = int_to_ptr.vmem [resolvable:$true] %s34_s28 }
   0x6   :  { %s532_s29 = scalar_lea.vmem %s35_s28, 256  ;;  %p537_p1 = scmp.lt.s32.totalorder %s35_s28, %s35_s28 }
   0x7   :  { %p533_p0 = scmp.ne.s32.totalorder %s35_s28, %s532_s29  ;;  %p538_p2 = scmp.lt.s32.totalorder %s532_s29, %s532_s29 }
   0x9   :  { %p539_p3 = por %p538_p2, %p537_p1 }
   0xb   :  { %p540_p4 = pnand %p539_p3, %p533_p0 }
   0xd   :  { %543 = shalt.err (!%p540_p4)
}
   0xe   :  { %s655_s30 = smov 128   ;;  %s656_s9 = smov 8  }
   0xf   :  { %40 = dma.hbm_to_vmem [thread:$0]  %s789_s1, 256, %s35_s28, [#allocation6], %s655_s30, %s655_s30, %s656_s9  }
  0x10   :  { %s657_s12 = smov [#allocation2]   ;;  %s658_s14 = smov [#allocation7]  }
  0x11   :  { %s25_s13 = sshll.u32 %s657_s12, 4  ;;  %s48_s15 = sshll.u32 %s658_s14, 4  ;;  %s26_s13 = int_to_ptr.vmem [resolvable:$true] %s25_s13  ;;  %s49_s15 = int_to_ptr.vmem [resolvable:$true] %s48_s15 }
  0x12   :  { %s552_s16 = scalar_lea.vmem %s26_s13, 128  ;;  %p557_p6 = scmp.lt.s32.totalorder %s26_s13, %s26_s13 }
  0x13   :  { %p553_p5 = scmp.ne.s32.totalorder %s26_s13, %s552_s16  ;;  %p558_p7 = scmp.lt.s32.totalorder %s552_s16, %s552_s16 }
  0x15   :  { %p559_p8 = por %p558_p7, %p557_p6 }
  0x17   :  { %p560_p9 = pnand %p559_p8, %p553_p5 }
  0x19   :  { %563 = shalt.err (!%p560_p9)
}
  0x1a   :  { %28 = dma.hbm_to_vmem [thread:$0]  %s788_s0, 128, %s26_s13, [#allocation3]  }
  0x1b   :  { %s572_s19 = scalar_lea.vmem %s49_s15, 2048  ;;  %p577_p11 = scmp.lt.s32.totalorder %s49_s15, %s49_s15 }
  0x1c   :  { %p573_p10 = scmp.ne.s32.totalorder %s49_s15, %s572_s19  ;;  %p578_p12 = scmp.lt.s32.totalorder %s572_s19, %s572_s19 }
  0x1e   :  { %p579_p13 = por %p578_p12, %p577_p11 }
  0x20   :  { %p580_p0 = pnand %p579_p13, %p573_p10 }
  0x22   :  { %583 = shalt.err (!%p580_p0)
}
  0x23   :  { %54 = dma.hbm_to_vmem [thread:$0]  %s791_s3, 2048, %s49_s15, [#allocation6], %s655_s30, %s655_s30, %s656_s9  }
  0x24   :  { %s659_s21 = smov [#allocation8]  }
  0x25   :  { %s62_s22 = sshll.u32 %s659_s21, 4  ;;  %s63_s22 = int_to_ptr.vmem [resolvable:$true] %s62_s22 }
  0x26   :  { %s592_s23 = scalar_lea.vmem %s63_s22, 2048  ;;  %p597_p2 = scmp.lt.s32.totalorder %s63_s22, %s63_s22 }
  0x27   :  { %p593_p1 = scmp.ne.s32.totalorder %s63_s22, %s592_s23  ;;  %p598_p3 = scmp.lt.s32.totalorder %s592_s23, %s592_s23 }
  0x29   :  { %p599_p4 = por %p598_p3, %p597_p2 }
  0x2b   :  { %p600_p5 = pnand %p599_p4, %p593_p1 }
  0x2d   :  { %603 = shalt.err (!%p600_p5)
}
  0x2e   :  { %68 = dma.hbm_to_vmem [thread:$0]  %s793_s5, 2048, %s63_s22, [#allocation9], %s655_s30, %s655_s30, %s656_s9  }
  0x2f   :  { %644 = dma.done.wait [#allocation3], 128  }
  0x30   :  { %645 = vsyncadd [#allocation3], 4294967168 }
  0x31   :  { %646 = dma.done.wait [#allocation6], 2304  }
  0x32   :  { %647 = vsyncadd [#allocation6], 4294964992 }
  0x33   :  { %648 = dma.done.wait [#allocation9], 2048  }
  0x34   :  { %649 = vsyncadd [#allocation9], 4294965248  ;;  %v660_v0 = vmov 0.0   ;;  %vm661_vm0 = vmmov 0   ;;  %v85_v1 = vld [vmem:[#allocation5 + $0x8] sm:$0xff]  ;;  %v84_v2 = vld [vmem:[#allocation5] sm:$0xff] }
  0x35   :  { %436 = vmatprep.subr.mxu0 %v660_v0  ;;  %440 = vmatprep.mubr.msk.f32.mxu0 %vm661_vm0, %v660_v0  ;;  %v83_v3 = vld [vmem:[#allocation2] sm:$0xff]  ;;  %vm93_vm1 = vcmask 130048   ;;  %v183_v4 = vld [vmem:[#allocation7 + $0x78] sm:$0xff]  ;;  %v182_v5 = vld [vmem:[#allocation7 + $0x70] sm:$0xff]  ;;  %s662_s28 = smov [#allocation10]   ;;  %vm355_vm2 = vcmask 64512  }
  0x36   :  { %443 = vmatprep.subr.mxu1 %v660_v0  ;;  %475 = vmatprep.mubr.msk.f32.mxu1 %vm661_vm0, %v660_v0  ;;  %v181_v6 = vld [vmem:[#allocation7 + $0x68] sm:$0xff]  ;;  %v180_v7 = vld [vmem:[#allocation7 + $0x60] sm:$0xff]  ;;  %v179_v8 = vld [vmem:[#allocation7 + $0x58] sm:$0xff]  ;;  %s370_s29 = sshll.u32 %s662_s28, 4  ;;  %s371_s29 = int_to_ptr.vmem [resolvable:$true] %s370_s29 }
  0x37   :  { %437 = vmatpush3.msra.mxu0 %v85_v1  ;;  %444 = vmatpush3.msra.mxu1 %v183_v4  ;;  %v178_v9 = vld [vmem:[#allocation7 + $0x50] sm:$0xff]  ;;  %v177_v10 = vld [vmem:[#allocation7 + $0x48] sm:$0xff]  ;;  %v176_v11 = vld [vmem:[#allocation7 + $0x40] sm:$0xff]  ;;  %p609_p7 = scmp.lt.s32.totalorder %s371_s29, %s371_s29 }
  0x38   :  { %438 = vmatprep.subr.mxu0 %v660_v0  ;;  %445 = vmatprep.subr.mxu1 %v660_v0  ;;  %v175_v12 = vld [vmem:[#allocation7 + $0x38] sm:$0xff]  ;;  %v174_v13 = vld [vmem:[#allocation7 + $0x30] sm:$0xff]  ;;  %v173_v14 = vld [vmem:[#allocation7 + $0x28] sm:$0xff] }
  0x39   :  { %439 = vmatpush3.msra.mxu0 %v84_v2  ;;  %446 = vmatpush3.msra.mxu1 %v182_v5  ;;  %v172_v15 = vld [vmem:[#allocation7 + $0x20] sm:$0xff]  ;;  %v171_v16 = vld [vmem:[#allocation7 + $0x18] sm:$0xff]  ;;  %v170_v17 = vld [vmem:[#allocation7 + $0x10] sm:$0xff] }
  0x3a   :  { %441 = vmatmul.mubr.msk.f32.vlgmr.msra.gmra.mxu0 %vm93_vm1, %v83_v3  ;;  %447 = vmatprep.subr.mxu1 %v660_v0  ;;  %v169_v18 = vld [vmem:[#allocation7 + $0x8] sm:$0xff]  ;;  %v168_v19 = vld [vmem:[#allocation7] sm:$0xff]  ;;  %v277_v20 = vld [vmem:[#allocation8 + $0x78] sm:$0xff] }
  0x3b   :  { %478 = vmatprep.subr.mxu0 %v660_v0  ;;  %448 = vmatpush3.msra.mxu1 %v181_v6  ;;  %v276_v21 = vld [vmem:[#allocation8 + $0x70] sm:$0xff]  ;;  %v275_v22 = vld [vmem:[#allocation8 + $0x68] sm:$0xff]  ;;  %v274_v23 = vld [vmem:[#allocation8 + $0x60] sm:$0xff] }
  0x3c   :  { %510 = vmatprep.mubr.msk.f32.mxu0 %vm661_vm0, %v660_v0  ;;  %449 = vmatprep.subr.mxu1 %v660_v0  ;;  %v273_v24 = vld [vmem:[#allocation8 + $0x58] sm:$0xff]  ;;  %v272_v25 = vld [vmem:[#allocation8 + $0x50] sm:$0xff]  ;;  %v271_v26 = vld [vmem:[#allocation8 + $0x48] sm:$0xff] }
  0x3d   :  { %450 = vmatpush3.msra.mxu1 %v180_v7  ;;  %479 = vmatpush3.msra.mxu0 %v277_v20  ;;  %v270_v27 = vld [vmem:[#allocation8 + $0x40] sm:$0xff]  ;;  %v269_v28 = vld [vmem:[#allocation8 + $0x38] sm:$0xff]  ;;  %v268_v29 = vld [vmem:[#allocation8 + $0x30] sm:$0xff] }
  0x3e   :  { %451 = vmatprep.subr.mxu1 %v660_v0  ;;  %480 = vmatprep.subr.mxu0 %v660_v0  ;;  %v267_v30 = vld [vmem:[#allocation8 + $0x28] sm:$0xff]  ;;  %v266_v31 = vld [vmem:[#allocation8 + $0x20] sm:$0xff]  ;;  %v265_v32 = vld [vmem:[#allocation8 + $0x18] sm:$0xff] }
  0x3f   :  { %452 = vmatpush3.msra.mxu1 %v179_v8  ;;  %481 = vmatpush3.msra.mxu0 %v276_v21  ;;  %v395_v33 = vld [vmem:[%s790_s2] ss:$0 sm:$0xff]  ;;  %v264_v38 = vld [vmem:[#allocation8 + $0x10] sm:$0xff]  ;;  %v262_v40 = vld [vmem:[#allocation8] sm:$0xff] }
  0x40   :  { %453 = vmatprep.subr.mxu1 %v660_v0  ;;  %482 = vmatprep.subr.mxu0 %v660_v0  ;;  %v263_v39 = vld [vmem:[#allocation8 + $0x8] sm:$0xff] }
  0x41   :  { %454 = vmatpush3.msra.mxu1 %v178_v9  ;;  %483 = vmatpush3.msra.mxu0 %v275_v22  ;;  %v397_v41 = vld [vmem:[%s792_s4] ss:$0 sm:$0xff]  ;;  %s604_s4 = scalar_lea.vmem %s371_s29, 128 }
  0x42   :  { %455 = vmatprep.subr.mxu1 %v660_v0  ;;  %484 = vmatprep.subr.mxu0 %v660_v0  ;;  %v398_v46 = vld [vmem:[%s794_s6] ss:$0 sm:$0xff]  ;;  %p605_p6 = scmp.ne.s32.totalorder %s371_s29, %s604_s4  ;;  %p610_p8 = scmp.lt.s32.totalorder %s604_s4, %s604_s4 }
  0x43   :  { %456 = vmatpush3.msra.mxu1 %v177_v10  ;;  %485 = vmatpush3.msra.mxu0 %v274_v23 }
  0x44   :  { %457 = vmatprep.subr.mxu1 %v660_v0  ;;  %486 = vmatprep.subr.mxu0 %v660_v0  ;;  %p611_p9 = por %p610_p8, %p609_p7 }
  0x45   :  { %458 = vmatpush3.msra.mxu1 %v176_v11  ;;  %487 = vmatpush3.msra.mxu0 %v273_v24 }
  0x46   :  { %459 = vmatprep.subr.mxu1 %v660_v0  ;;  %488 = vmatprep.subr.mxu0 %v660_v0  ;;  %p612_p10 = pnand %p611_p9, %p605_p6 }
  0x47   :  { %460 = vmatpush3.msra.mxu1 %v175_v12  ;;  %489 = vmatpush3.msra.mxu0 %v272_v25 }
  0x48   :  { %461 = vmatprep.subr.mxu1 %v660_v0  ;;  %490 = vmatprep.subr.mxu0 %v660_v0 }
  0x49   :  { %462 = vmatpush3.msra.mxu1 %v174_v13  ;;  %491 = vmatpush3.msra.mxu0 %v271_v26 }
  0x4a   :  { %463 = vmatprep.subr.mxu1 %v660_v0  ;;  %492 = vmatprep.subr.mxu0 %v660_v0 }
  0x4b   :  { %464 = vmatpush3.msra.mxu1 %v173_v14  ;;  %493 = vmatpush3.msra.mxu0 %v270_v27 }
  0x4c   :  { %465 = vmatprep.subr.mxu1 %v660_v0  ;;  %494 = vmatprep.subr.mxu0 %v660_v0 }
  0x4d   :  { %466 = vmatpush3.msra.mxu1 %v172_v15  ;;  %495 = vmatpush3.msra.mxu0 %v269_v28 }
  0x4e   :  { %467 = vmatprep.subr.mxu1 %v660_v0  ;;  %496 = vmatprep.subr.mxu0 %v660_v0 }
  0x4f   :  { %468 = vmatpush3.msra.mxu1 %v171_v16  ;;  %497 = vmatpush3.msra.mxu0 %v268_v29 }
  0x50   :  { %469 = vmatprep.subr.mxu1 %v660_v0  ;;  %498 = vmatprep.subr.mxu0 %v660_v0 }
  0x51   :  { %470 = vmatpush3.msra.mxu1 %v170_v17  ;;  %499 = vmatpush3.msra.mxu0 %v267_v30 }
  0x52   :  { %471 = vmatprep.subr.mxu1 %v660_v0  ;;  %500 = vmatprep.subr.mxu0 %v660_v0 }
  0x53   :  { %472 = vmatpush3.msra.mxu1 %v169_v18  ;;  %501 = vmatpush3.msra.mxu0 %v266_v31 }
  0x54   :  { %473 = vmatprep.subr.mxu1 %v660_v0  ;;  %502 = vmatprep.subr.mxu0 %v660_v0 }
  0x55   :  { %474 = vmatpush3.msra.mxu1 %v168_v19  ;;  %503 = vmatpush3.msra.mxu0 %v265_v32 }
  0x56   :  { %504 = vmatprep.subr.mxu0 %v660_v0 }
  0x57   :  { %505 = vmatpush3.msra.mxu0 %v264_v38 }
  0x58   :  { %506 = vmatprep.subr.mxu0 %v660_v0 }
  0x59   :  { %507 = vmatpush3.msra.mxu0 %v263_v39 }
  0x5a   :  { %508 = vmatprep.subr.mxu0 %v660_v0 }
  0x5b   :  { %509 = vmatpush3.msra.mxu0 %v262_v40 }
  0xfa   :  { %v163_v34 = vpop.f32.mrf.mxu0 }
  0xfb   :  { %v164_v35 = vadd.f32 %v395_v33, %v163_v34 }
  0xfc   :  { %v442_v36 = vpop.f32.mrf.mxu0 }
  0xfd   :  { %v167_v37 = vmax.f32 %v164_v35, 0.0 }
  0xff   :  { %476 = vmatmul.mubr.f32.vlgmr.msra.gmra.mxu1 %v167_v37 }
 0x1bf   :  { %v257_v42 = vpop.f32.mrf.mxu1 }
 0x1c0   :  { %v258_v43 = vadd.f32 %v397_v41, %v257_v42 }
 0x1c1   :  { %v477_v44 = vpop.f32.mrf.mxu1 }
 0x1c2   :  { %v261_v45 = vmax.f32 %v258_v43, 0.0 }
 0x1c4   :  { %511 = vmatmul.mubr.f32.vlgmr.msra.gmra.mxu0 %v261_v45 }
 0x284   :  { %v351_v47 = vpop.f32.mrf.mxu0 }
 0x285   :  { %v352_v48 = vadd.f32 %v398_v46, %v351_v47 }
 0x286   :  { %v512_v49 = vpop.f32.mrf.mxu0 }
 0x287   :  { %v357_v50 = vmax.f32 %v352_v48, -20.0  ;;  %356 = vst.msk [vmem:[#allocation10] sm:$0xff] %vm355_vm2, %v352_v48 }
 0x288   :  { %615 = shalt.err (!%p612_p10)
}
 0x289   :  { %373 = dma.vmem_to_hbm [thread:$0]  %s371_s29, 128, %s795_s7, [#allocation4]   ;;  %v358_v51 = vmin.f32 %v357_v50, 2.0 }
 0x28a   :  { %s663_s6 = smov 120   ;;  %s664_s10 = smov [#allocation11]  }
 0x28b   :  { %360 = vrot.lane.b32.xlu0 %v358_v51, %s663_s6  ;;  %s380_s11 = sshll.u32 %s664_s10, 4  ;;  %s381_s11 = int_to_ptr.vmem [resolvable:$true] %s380_s11 }
 0x28c   :  { %s624_s12 = scalar_lea.vmem %s381_s11, 128  ;;  %p629_p12 = scmp.lt.s32.totalorder %s381_s11, %s381_s11 }
 0x28d   :  { %p625_p11 = scmp.ne.s32.totalorder %s381_s11, %s624_s12  ;;  %p630_p13 = scmp.lt.s32.totalorder %s624_s12, %s624_s12 }
 0x28f   :  { %p631_p0 = por %p630_p13, %p629_p12 }
 0x291   :  { %p632_p1 = pnand %p631_p0, %p625_p11 }
 0x2fd   :  { %v361_v52 = vpop.permute.xlu0 %360 }
 0x2fe   :  { %363 = vst.msk [vmem:[#allocation11] sm:$0xff] %vm355_vm2, %v361_v52 }
 0x2ff   :  { %635 = shalt.err (!%p632_p1)
}
 0x300   :  { %383 = dma.vmem_to_hbm [thread:$0]  %s381_s11, 128, %s796_s8, [#allocation12]  }
 0x301   :  { %650 = dma.done.wait [#allocation4], 128  }
 0x302   :  { %651 = vsyncadd [#allocation4], 4294967168 }
 0x303   :  { %652 = dma.done.wait [#allocation12], 128  }
 0x304   :  { %653 = vsyncadd [#allocation12], 4294967168 }
 0x305   :  { %390 = vsyncpa [#allocation3], 1 }
 0x306   :  { %391 = vsyncpa [#allocation6], 1 }
 0x307   :  { %392 = vsyncpa [#allocation9], 1 }
 0x308   :  { %393 = vsyncpa [#allocation4], 1 }
 0x309   :  { %394 = vsyncpa [#allocation12], 1 }

</bundles_post_ra>
